<compile_context>
chip_gen: v6e
topology: v6e:2x2x1
jax: 0.10.0
libtpu: 0.0.40
codegen_flags: <defaults>
</compile_context>

<pallas_src>
import functools

import jax
import jax.numpy as jnp
from jax import lax
from jax.experimental import pallas as pl
from jax.experimental.pallas import tpu as pltpu

LANE = 128
SUBLANE = 8


def _tweedie_elements(pred, target, p):
    """Per-element Tweedie loss terms (before the mean), in float32.

    Matches the PyTorch forward: pred is clamped to [1e-5, 10.0] first.
    """
    eps = 1e-5
    pred = jnp.clip(pred.astype(jnp.float32), eps, 10.0)
    target = target.astype(jnp.float32)

    if p == 2.0:
        return pred / target + jnp.log(target)

    a = 1.0 - p
    b = 2.0 - p
    if p == 1.5:
        # Half-integer fast path: sqrt / rsqrt only (EUP-cheap).
        pred_b = jnp.sqrt(pred)        # pred ** 0.5
        pred_a = lax.rsqrt(pred)       # pred ** -0.5
        target_b = jnp.sqrt(target)    # target ** 0.5 (0 -> 0, like pow)
    else:
        # Generic p: one log(pred) + one exp, then pred^(1-p) = pred^(2-p)/pred
        # (pred >= eps > 0).  Targets are >= 0 in the Tweedie use case, so
        # exp(b * log(target)) matches torch.pow (log(0) = -inf -> exp -> 0).
        pred_b = jnp.exp(b * jnp.log(pred))
        pred_a = pred_b / pred
        target_b = jnp.exp(b * jnp.log(target))

    if a == 0.0 or b == 0.0:
        # Degenerate p (e.g. p == 1): keep the reference's divide-by-zero
        # inf/nan semantics instead of raising in Python.
        return (target_b + pred_b) / (a * b) - (target * pred_a) / a

    inv_ab = 1.0 / (a * b)   # static Python floats -> folded at trace time
    inv_a = 1.0 / a
    # term1 + term2 - term3, constant denominators pre-inverted.
    return (target_b + pred_b) * inv_ab - (target * pred_a) * inv_a


def _tweedie_kernel(pred_ref, target_ref, out_ref, *, p, tr):
    """Sum the per-element loss of one (tr, 128) tile into the resident
    per-chunk (1, 8, 128) float32 accumulator block."""
    i = pl.program_id(1)   # tile index within chunk (reduction axis)

    @pl.when(i == 0)
    def _():
        out_ref[...] = jnp.zeros_like(out_ref)

    elem = _tweedie_elements(pred_ref[...], target_ref[...], p)
    # VPU-only partial reduce: collapse the tile to one (8, 128) vreg and
    # accumulate into the resident per-chunk output block.
    reduced = jnp.sum(elem.reshape(tr // SUBLANE, SUBLANE, LANE), axis=0)
    out_ref[...] += reduced[None, :, :]


def _min_sublane_multiple(dtype):
    """Minimum tile rows for a dtype: 8 (32-bit), 16 (bf16), 32 (8-bit)."""
    itemsize = jnp.dtype(dtype).itemsize
    return SUBLANE * max(1, 4 // max(1, itemsize))


def tweedie_loss(pred, target, variance_power=1.5, *, rows_per_tile=2048):
    """Tweedie loss (scalar) computed with a Pallas TPU streaming reduction.

    rows_per_tile: rows of 128 lanes per grid step.  2048 (default) moves
    ~2 MiB of f32 input per step; on v7x, 4096 is a good choice and the
    wrapper raises vmem_limit_bytes automatically when needed.
    """
    assert pred.shape == target.shape, "pred/target must have the same shape"
    p = float(variance_power)
    n_elems = int(pred.size)
    assert n_elems > 0

    flat_pred = jnp.ravel(pred)
    flat_target = jnp.ravel(target)

    # Tile geometry: rows of 128 lanes; rows per tile must be a multiple of
    # the dtype's packed sublane requirement (8 f32 / 16 bf16 / 32 int8).
    mult = max(_min_sublane_multiple(pred.dtype),
               _min_sublane_multiple(target.dtype))
    rows_full = n_elems // LANE
    tr = min(int(rows_per_tile), rows_full)
    tr = (tr // mult) * mult

    total = jnp.float32(0.0)
    kernel_elems = 0

    if tr > 0:
        total_tiles = rows_full // tr
        # Leading "parallel" axis: 2 chunks when there is enough work so both
        # v7x TensorCores stream half each.  Never induces padding; an odd
        # leftover tile goes to the jnp epilogue below.
        num_chunks = 2 if total_tiles >= 2 else 1
        tiles_per_chunk = total_tiles // num_chunks
        kernel_rows = num_chunks * tiles_per_chunk * tr
        kernel_elems = kernel_rows * LANE

        pred2 = flat_pred[:kernel_elems].reshape(kernel_rows, LANE)
        target2 = flat_target[:kernel_elems].reshape(kernel_rows, LANE)

        kernel = functools.partial(_tweedie_kernel, p=p, tr=tr)

        # Double-buffered input VMEM footprint; raise the scoped-VMEM limit
        # only when a large tile (e.g. rows_per_tile=4096 on v7x) needs it,
        # staying well under every chip's physical VMEM.
        in_buf_bytes = 2 * tr * LANE * (pred2.dtype.itemsize
                                        + target2.dtype.itemsize)
        vmem_limit = None
        if in_buf_bytes > (12 << 20):
            vmem_limit = min(in_buf_bytes + (8 << 20), 56 << 20)

        partials = pl.pallas_call(
            kernel,
            out_shape=jax.ShapeDtypeStruct((num_chunks, SUBLANE, LANE),
                                           jnp.float32),
            grid_spec=pltpu.PrefetchScalarGridSpec(
                num_scalar_prefetch=0,
                grid=(num_chunks, tiles_per_chunk),
                in_specs=[
                    pl.BlockSpec((tr, LANE),
                                 lambda c, i: (c * tiles_per_chunk + i, 0)),
                    pl.BlockSpec((tr, LANE),
                                 lambda c, i: (c * tiles_per_chunk + i, 0)),
                ],
                out_specs=pl.BlockSpec((1, SUBLANE, LANE),
                                       lambda c, i: (c, 0, 0)),
            ),
            compiler_params=pltpu.CompilerParams(
                dimension_semantics=("parallel", "arbitrary"),
                vmem_limit_bytes=vmem_limit),
        )(pred2, target2)

        total = jnp.sum(partials)

    if kernel_elems < n_elems:
        # Ragged remainder (< 2 tiles + a partial lane row): tiny fused-jnp
        # epilogue instead of padding + masking the whole stream.
        tail = _tweedie_elements(flat_pred[kernel_elems:],
                                 flat_target[kernel_elems:], p)
        total = total + jnp.sum(tail)

    return total / jnp.float32(n_elems)


def tweedie_loss_ref(pred, target, variance_power=1.5):
    """Pure-JAX reference: direct translation of the PyTorch forward."""
    p = float(variance_power)
    eps = 1e-5
    pred = jnp.clip(pred.astype(jnp.float32), eps, 10.0)
    target = target.astype(jnp.float32)
    if p == 2.0:
        return jnp.mean(pred / target + jnp.log(target))
    term1 = jnp.power(target, 2.0 - p) / ((1.0 - p) * (2.0 - p))
    term2 = jnp.power(pred, 2.0 - p) / ((1.0 - p) * (2.0 - p))
    term3 = target * jnp.power(pred, 1.0 - p) / (1.0 - p)
    return jnp.mean(term1 - term3 + term2)


if __name__ == "__main__":
    # TweedieLoss has no learned parameters; only the static variance_power.
    key = jax.random.PRNGKey(0)
    k1, k2, k3, k4 = jax.random.split(key, 4)

    def check(loss, ref, tag):
        loss = jax.block_until_ready(loss)
        assert jnp.allclose(loss, ref, rtol=1e-4, atol=1e-5), (tag, loss, ref)

    # Small synthetic regression outputs/targets, NCHW-shaped; zero-inflated,
    # non-negative targets (Tweedie's use case).
    shape = (2, 4, 16, 16)                     # 2048 elements -> 16 rows of 128
    pred = jax.random.uniform(k1, shape, jnp.float32, minval=0.0, maxval=5.0)
    target = jax.random.uniform(k2, shape, jnp.float32, minval=0.0, maxval=5.0)
    target = jnp.where(target < 1.0, 0.0, target)   # inject zeros

    # Default p = 1.5 (sqrt/rsqrt fast path), single full-extent tile.
    check(tweedie_loss(pred, target, 1.5),
          tweedie_loss_ref(pred, target, 1.5), "p=1.5")

    # Generic non-integer p (log/exp powers, pred^(1-p) = pred^(2-p)/pred).
    check(tweedie_loss(pred, target, 1.3),
          tweedie_loss_ref(pred, target, 1.3), "p=1.3")

    # Multi-tile grid: 2-chunk parallel axis + in-kernel accumulation across
    # the reduction axis (tiny rows_per_tile just to exercise the pipeline).
    shape_big = (4, 4, 16, 16)                 # 4096 elements -> 32 rows
    pred_b = jax.random.uniform(k3, shape_big, jnp.float32, minval=0.0, maxval=5.0)
    target_b = jax.random.uniform(k4, shape_big, jnp.float32, minval=0.0, maxval=5.0)
    target_b = jnp.where(target_b < 1.0, 0.0, target_b)
    check(tweedie_loss(pred_b, target_b, 1.5, rows_per_tile=8),
          tweedie_loss_ref(pred_b, target_b, 1.5), "multi-tile")

    # Flattened size not a multiple of the tile: tile-aligned prefix in the
    # kernel + tiny jnp epilogue (no padding / masking anywhere).
    shape_odd = (2, 3, 16, 16)                 # 1536 elements -> 12 rows
    pred_o = jax.random.uniform(k1, shape_odd, jnp.float32, minval=0.0, maxval=5.0)
    target_o = jax.random.uniform(k2, shape_odd, jnp.float32, minval=0.0, maxval=5.0)
    target_o = jnp.where(target_o < 1.0, 0.0, target_o)
    check(tweedie_loss(pred_o, target_o, 1.5),
          tweedie_loss_ref(pred_o, target_o, 1.5), "ragged")

    # bf16 pass-through (tile rows rounded to the packed 16-row minimum).
    check(tweedie_loss(pred.astype(jnp.bfloat16), target.astype(jnp.bfloat16), 1.5),
          tweedie_loss_ref(pred.astype(jnp.bfloat16), target.astype(jnp.bfloat16), 1.5),
          "bf16")

    # p == 2.0 branch (pred/target + log(target)); strictly positive targets.
    target_pos = target + 0.5
    check(tweedie_loss(pred, target_pos, 2.0),
          tweedie_loss_ref(pred, target_pos, 2.0), "p=2.0")

    print("KERNEL_OK")
</pallas_src>

<mosaic_0001>
module attributes {stable_mosaic.version = 11 : i64} {
  func.func @_tweedie_kernel(%arg0: i32, %arg1: i32, %arg2: memref<16x128xf32, #tpu.memory_space<vmem>>, %arg3: memref<16x128xf32, #tpu.memory_space<vmem>>, %arg4: memref<1x8x128xf32, #tpu.memory_space<vmem>>) attributes {dimension_semantics = [#tpu.dimension_semantics<parallel>, #tpu.dimension_semantics<arbitrary>], iteration_bounds = array<i64: 1, 1>, scalar_prefetch = 0 : i64, scratch_operands = 0 : i64, tpu.core_type = #tpu.core_type<tc>, window_params = [{transform_indices = @transform_0, window_bounds = array<i64: 16, 128>}, {transform_indices = @transform_1, window_bounds = array<i64: 16, 128>}, {transform_indices = @transform_2, window_bounds = array<i64: 1, 8, 128>}]} {
    %c0_i32 = arith.constant 0 : i32
    %0 = arith.cmpi eq, %arg1, %c0_i32 : i32
    %1 = arith.extui %0 : i1 to i32
    %c0_i32_0 = arith.constant 0 : i32
    %2 = arith.cmpi ne, %1, %c0_i32_0 : i32
    scf.if %2 {
      %cst_14 = arith.constant 0.000000e+00 : f32
      %25 = vector.broadcast %cst_14 : f32 to vector<1x8x128xf32>
      %c0_15 = arith.constant 0 : index
      %c0_16 = arith.constant 0 : index
      %c0_17 = arith.constant 0 : index
      %26 = vector.load %arg4[%c0_15, %c0_16, %c0_17] : memref<1x8x128xf32, #tpu.memory_space<vmem>>, vector<1x8x128xf32>
      tpu.vector_store %arg4[%c0_15, %c0_16, %c0_17], %25 {strides = array<i32>} : memref<1x8x128xf32, #tpu.memory_space<vmem>>, vector<1x8x128xf32>,
    } else {
    }
    %c0 = arith.constant 0 : index
    %c0_1 = arith.constant 0 : index
    %3 = vector.load %arg2[%c0, %c0_1] : memref<16x128xf32, #tpu.memory_space<vmem>>, vector<16x128xf32>
    %c0_2 = arith.constant 0 : index
    %c0_3 = arith.constant 0 : index
    %4 = vector.load %arg3[%c0_2, %c0_3] : memref<16x128xf32, #tpu.memory_space<vmem>>, vector<16x128xf32>
    %cst = arith.constant 9.99999974E-6 : f32
    %cst_4 = arith.constant 1.000000e+01 : f32
    %5 = vector.broadcast %cst : f32 to vector<16x128xf32>
    %6 = arith.maximumf %5, %3 : vector<16x128xf32>
    %7 = vector.broadcast %cst_4 : f32 to vector<16x128xf32>
    %8 = arith.minimumf %7, %6 : vector<16x128xf32>
    %9 = math.sqrt %8 : vector<16x128xf32>
    %10 = math.rsqrt %8 : vector<16x128xf32>
    %11 = math.sqrt %4 : vector<16x128xf32>
    %12 = arith.addf %11, %9 : vector<16x128xf32>
    %cst_5 = arith.constant -4.000000e+00 : f32
    %13 = vector.broadcast %cst_5 : f32 to vector<16x128xf32>
    %14 = arith.mulf %12, %13 : vector<16x128xf32>
    %15 = arith.mulf %4, %10 : vector<16x128xf32>
    %cst_6 = arith.constant -2.000000e+00 : f32
    %16 = vector.broadcast %cst_6 : f32 to vector<16x128xf32>
    %17 = arith.mulf %15, %16 : vector<16x128xf32>
    %18 = arith.subf %14, %17 : vector<16x128xf32>
    %19 = vector.shape_cast %18 : vector<16x128xf32> to vector<2x8x128xf32>
    %cst_7 = arith.constant dense<0.000000e+00> : vector<8x128xf32>
    %20 = vector.multi_reduction <add>, %19, %cst_7 [0] : vector<2x8x128xf32> to vector<8x128xf32>
    %c0_8 = arith.constant 0 : index
    %c0_9 = arith.constant 0 : index
    %c0_10 = arith.constant 0 : index
    %21 = vector.load %arg4[%c0_8, %c0_9, %c0_10] : memref<1x8x128xf32, #tpu.memory_space<vmem>>, vector<1x8x128xf32>
    %22 = vector.shape_cast %20 : vector<8x128xf32> to vector<1x8x128xf32>
    %23 = arith.addf %21, %22 : vector<1x8x128xf32>
    %c0_11 = arith.constant 0 : index
    %c0_12 = arith.constant 0 : index
    %c0_13 = arith.constant 0 : index
    %24 = vector.load %arg4[%c0_11, %c0_12, %c0_13] : memref<1x8x128xf32, #tpu.memory_space<vmem>>, vector<1x8x128xf32>
    tpu.vector_store %arg4[%c0_11, %c0_12, %c0_13], %23 {strides = array<i32>} : memref<1x8x128xf32, #tpu.memory_space<vmem>>, vector<1x8x128xf32>,
    return
  }
  func.func @transform_0(%arg0: i32, %arg1: i32) -> (i32, i32) {
    %c1_i32 = arith.constant 1 : i32
    %0 = arith.muli %arg0, %c1_i32 : i32
    %1 = arith.addi %0, %arg1 : i32
    %c0_i32 = arith.constant 0 : i32
    %c0_i32_0 = arith.constant 0 : i32
    return %1, %c0_i32 : i32, i32
  }
  func.func @transform_1(%arg0: i32, %arg1: i32) -> (i32, i32) {
    %c1_i32 = arith.constant 1 : i32
    %0 = arith.muli %arg0, %c1_i32 : i32
    %1 = arith.addi %0, %arg1 : i32
    %c0_i32 = arith.constant 0 : i32
    %c0_i32_0 = arith.constant 0 : i32
    return %1, %c0_i32 : i32, i32
  }
  func.func @transform_2(%arg0: i32, %arg1: i32) -> (i32, i32, i32) {
    %c0_i32 = arith.constant 0 : i32
    %c0_i32_0 = arith.constant 0 : i32
    %c0_i32_1 = arith.constant 0 : i32
    return %arg0, %c0_i32, %c0_i32_0 : i32, i32, i32
  }
}

</mosaic_0001>

<bundles_post_ra>
// kernel: tpu_custom_call.1
= control target key start
LH: loop header
LB: loop body
LE: loop exit
PB: predicated region body
PF: predicated region fallthrough
CT: control target
= control target key end

     0   :  { %7 = vsyncpa [#allocation3], 0  ;;  %s235_s0 = inlined_call_operand.hbm [shape: f32[16,128], index: 0, kind: input, shape index: {}]   ;;  %s236_s1 = inlined_call_operand.hbm [shape: f32[16,128], index: 1, kind: input, shape index: {}]   ;;  %s237_s2 = inlined_call_operand.hbm [shape: f32[1,8,128], index: 2, kind: output, shape index: {}]  }
   0x1   :  { %8 = vsyncpa [#allocation6], 0 }
   0x2   :  { %9 = vsyncpa [#allocation4], 0  ;;  %s205_s9 = smov [#allocation2]  }
   0x3   :  { %s19_s10 = sshll.u32 %s205_s9, 4  ;;  %s20_s10 = int_to_ptr.vmem [resolvable:$true] %s19_s10 }
   0x4   :  { %s147_s11 = scalar_lea.vmem %s20_s10, 256  ;;  %p152_p1 = scmp.lt.s32.totalorder %s20_s10, %s20_s10 }
   0x5   :  { %p148_p0 = scmp.ne.s32.totalorder %s20_s10, %s147_s11  ;;  %p153_p2 = scmp.lt.s32.totalorder %s147_s11, %s147_s11 }
   0x7   :  { %p154_p3 = por %p153_p2, %p152_p1 }
   0x9   :  { %p155_p4 = pnand %p154_p3, %p148_p0 }
   0xb   :  { %158 = shalt.err (!%p155_p4)
}
   0xc   :  { %s206_s12 = smov 128   ;;  %s207_s13 = smov 8  }
   0xd   :  { %25 = dma.hbm_to_vmem [thread:$0]  %s235_s0, 256, %s20_s10, [#allocation3], %s206_s12, %s206_s12, %s207_s13  }
   0xe   :  { %s208_s16 = smov [#allocation5]  }
   0xf   :  { %s35_s17 = sshll.u32 %s208_s16, 4  ;;  %s36_s17 = int_to_ptr.vmem [resolvable:$true] %s35_s17 }
  0x10   :  { %s167_s18 = scalar_lea.vmem %s36_s17, 256  ;;  %p172_p6 = scmp.lt.s32.totalorder %s36_s17, %s36_s17 }
  0x11   :  { %p168_p5 = scmp.ne.s32.totalorder %s36_s17, %s167_s18  ;;  %p173_p7 = scmp.lt.s32.totalorder %s167_s18, %s167_s18 }
  0x13   :  { %p174_p8 = por %p173_p7, %p172_p6 }
  0x15   :  { %p175_p9 = pnand %p174_p8, %p168_p5 }
  0x17   :  { %178 = shalt.err (!%p175_p9)
}
  0x18   :  { %41 = dma.hbm_to_vmem [thread:$0]  %s236_s1, 256, %s36_s17, [#allocation6], %s206_s12, %s206_s12, %s207_s13  }
  0x19   :  { %199 = dma.done.wait [#allocation3], 256  }
  0x1a   :  { %200 = vsyncadd [#allocation3], 4294967040 }
  0x1b   :  { %201 = dma.done.wait [#allocation6], 256  }
  0x1c   :  { %202 = vsyncadd [#allocation6], 4294967040  ;;  %v57_v0 = vld [vmem:[#allocation2] sm:$0xff]  ;;  %v58_v1 = vld [vmem:[#allocation2 + $0x8] sm:$0xff]  ;;  %s209_s0 = smov [#allocation7]  }
  0x1d   :  { %v59_v2 = vld [vmem:[#allocation5] sm:$0xff]  ;;  %v60_v3 = vld [vmem:[#allocation5 + $0x8] sm:$0xff]  ;;  %v61_v4 = vmax.f32 %v57_v0, 1e-05  ;;  %v62_v5 = vmax.f32 %v58_v1, 1e-05 }
  0x1e   :  { %131 = vrsqrt.f32 %v59_v2  ;;  %vm83_vm0 = vcmp.eq.f32.partialorder %v59_v2, inf  ;;  %vm90_vm1 = vcmp.eq.f32.partialorder %v60_v3, inf  ;;  %v86_v11 = vand.u32 2147483648, %v59_v2  ;;  %s115_s1 = sshll.u32 %s209_s0, 4  ;;  %s116_s1 = int_to_ptr.vmem [resolvable:$true] %s115_s1 }
  0x1f   :  { %133 = vrsqrt.f32 %v60_v3  ;;  %v63_v6 = vmin.f32 %v61_v4, 10.0  ;;  %v64_v7 = vmin.f32 %v62_v5, 10.0  ;;  %vm85_vm2 = vcmp.eq.f32.partialorder %v59_v2, 0.0  ;;  %s179_s21 = scalar_lea.vmem %s116_s1, 128  ;;  %p184_p11 = scmp.lt.s32.totalorder %s116_s1, %s116_s1 }
  0x20   :  { %vm92_vm3 = vcmp.eq.f32.partialorder %v60_v3, 0.0  ;;  %v93_v14 = vand.u32 2147483648, %v60_v3  ;;  %p180_p10 = scmp.ne.s32.totalorder %s116_s1, %s179_s21  ;;  %p185_p12 = scmp.lt.s32.totalorder %s179_s21, %s179_s21 }
  0x21   :  { %135 = vrsqrt.f32 %v63_v6  ;;  %vm67_vm4 = vcmp.eq.f32.partialorder %v63_v6, inf  ;;  %vm69_vm5 = vcmp.eq.f32.partialorder %v63_v6, 0.0  ;;  %v70_v16 = vand.u32 2147483648, %v63_v6 }
  0x22   :  { %137 = vrsqrt.f32 %v64_v7  ;;  %vm74_vm6 = vcmp.eq.f32.partialorder %v64_v7, inf  ;;  %v77_v20 = vand.u32 2147483648, %v64_v7  ;;  %vm76_vm7 = vcmp.eq.f32.partialorder %v64_v7, 0.0  ;;  %p186_p13 = por %p185_p12, %p184_p11 }
  0x24   :  { %p187_p0 = pnand %p186_p13, %p180_p10 }
  0x2b   :  { %v132_v8 = vpop.eup %131 }
  0x2c   :  { %v134_v9 = vpop.eup %133  ;;  %v82_v10 = vmul.f32 %v132_v8, %v59_v2 }
  0x2d   :  { %v89_v12 = vmul.f32 %v134_v9, %v60_v3 }
  0x2e   :  { %v84_v13 = vsel %vm83_vm0, %v59_v2, %v82_v10  ;;  %v136_v15 = vpop.eup %135 }
  0x2f   :  { %v91_v17 = vsel %vm90_vm1, %v60_v3, %v89_v12  ;;  %v138_v18 = vpop.eup %137  ;;  %v66_v19 = vmul.f32 %v136_v15, %v63_v6  ;;  %v99_v21 = vmul.f32 %v136_v15, %v59_v2  ;;  %v87_v23 = vsel %vm85_vm2, %v86_v11, %v84_v13 }
  0x30   :  { %v73_v22 = vmul.f32 %v138_v18, %v64_v7  ;;  %v100_v24 = vmul.f32 %v138_v18, %v60_v3  ;;  %v94_v26 = vsel %vm92_vm3, %v93_v14, %v91_v17 }
  0x31   :  { %v68_v25 = vsel %vm67_vm4, %v63_v6, %v66_v19  ;;  %v101_v31 = vmul.f32 -2.0, %v99_v21 }
  0x32   :  { %v71_v27 = vsel %vm69_vm5, %v70_v16, %v68_v25  ;;  %v75_v28 = vsel %vm74_vm6, %v64_v7, %v73_v22  ;;  %v102_v33 = vmul.f32 -2.0, %v100_v24 }
  0x33   :  { %v78_v29 = vsel %vm76_vm7, %v77_v20, %v75_v28  ;;  %v95_v30 = vadd.f32 %v87_v23, %v71_v27 }
  0x34   :  { %v96_v32 = vadd.f32 %v94_v26, %v78_v29 }
  0x35   :  { %v97_v34 = vmul.f32 -4.0, %v95_v30 }
  0x36   :  { %v98_v35 = vmul.f32 -4.0, %v96_v32 }
  0x37   :  { %v103_v36 = vsub.f32 %v97_v34, %v101_v31 }
  0x38   :  { %v104_v37 = vsub.f32 %v98_v35, %v102_v33 }
  0x3a   :  { %v105_v38 = vadd.f32 %v104_v37, %v103_v36 }
  0x3c   :  { %108 = vst [vmem:[#allocation7] sm:$0xff] %v105_v38 }
  0x3d   :  { %190 = shalt.err (!%p187_p0)
}
  0x3e   :  { %118 = dma.vmem_to_hbm [thread:$0]  %s116_s1, 128, %s237_s2, [#allocation4]  }
  0x3f   :  { %203 = dma.done.wait [#allocation4], 128  }
  0x40   :  { %204 = vsyncadd [#allocation4], 4294967168 }
  0x41   :  { %122 = vsyncpa [#allocation3], 1 }
  0x42   :  { %123 = vsyncpa [#allocation6], 1 }
  0x43   :  { %124 = vsyncpa [#allocation4], 1 }

</bundles_post_ra>
